<compile_context>
chip_gen: v7x
topology: tpu7x:2x2x1
jax: 0.10.0
libtpu: 0.0.40
codegen_flags: <defaults>
</compile_context>

<pallas_src>
import functools

import jax
import jax.numpy as jnp
from jax import lax
from jax.experimental import pallas as pl
from jax.experimental.pallas import tpu as pltpu


def img_to_patch(x, patch_size):
    """JAX equivalent of the PyTorch img_to_patch (flatten_channels=True)."""
    B, C, H, W = x.shape
    p = patch_size
    x = x.reshape(B, C, H // p, p, W // p, p)
    x = jnp.transpose(x, (0, 2, 4, 1, 3, 5))              # [B, H/p, W/p, C, p, p]
    return x.reshape(B, (H // p) * (W // p), C * p * p)   # [B, T, D]


def _round_up(v, m):
    return (v + m - 1) // m * m


def _pick_row_block(B, T, D, E, itemsize):
    """Images per grid step (BB): target >=256 matmul rows/step, divide B, and keep
    double-buffered tiles + resident params under a v7x-safe VMEM budget."""
    target_rows = 256
    bb = max(1, min(B, -(-target_rows // T)))             # ceil(256 / T), capped at B
    while B % bb != 0:
        bb -= 1

    def vmem_bytes(b):
        tile_in = b * T * D * itemsize
        tile_out = b * T * E * 4
        resident = E * D * itemsize + E * 4 + b * T * E * 4
        return 2 * (tile_in + tile_out) + 2 * resident     # double-buffered I/O

    budget = 24 * 1024 * 1024                              # conservative for v7x 64 MiB
    while bb > 1 and vmem_bytes(bb) > budget:
        bb = max(1, bb // 2)
        while B % bb != 0:
            bb -= 1
    # Row tiles must be sublane(8)-aligned unless one block covers the full row dim.
    if (bb * T) % 8 != 0:
        bb = B
    return bb


def _patch_proj_kernel(x_ref, w_ref, b_ref, pos_ref, o_ref):
    # x_ref  : (RB, Dp)  patch rows for the BB images of this grid step
    # w_ref  : (Ep, Dp)  linear weight in PyTorch (out, in) layout (no transpose pass)
    # b_ref  : (1, Ep)   bias
    # pos_ref: (RB, Ep)  positional-embedding rows 1..T, tiled BB times (grid-invariant)
    # o_ref  : (RB, Ep)  projected + pos-embedded patch tokens (lane/sublane aligned)
    proj = lax.dot_general(
        x_ref[...], w_ref[...],
        dimension_numbers=(((1,), (1,)), ((), ())),        # contract D on both sides
        preferred_element_type=jnp.float32,                # MXU, f32 accumulate
    )
    o_ref[...] = (proj + b_ref[...] + pos_ref[...]).astype(o_ref.dtype)


@functools.partial(jax.jit, static_argnames=("patch_size", "compute_dtype"))
def patch_pos_emb(x, weight, bias, cls_token, pos_embedding, *, patch_size,
                  compute_dtype=None):
    """x: [B, C, H, W] (NCHW, like PyTorch).  Returns [B, 1+T, E] float32."""
    patches = img_to_patch(x, patch_size)                  # [B, T, D]
    B, T, D = patches.shape
    E = weight.shape[0]

    # Optional bf16 MXU path (v6e/v7x): cast matmul operands only; adds stay f32.
    if compute_dtype is not None:
        patches = patches.astype(compute_dtype)
        weight_c = weight.astype(compute_dtype)
    else:
        weight_c = weight
    itemsize = jnp.dtype(patches.dtype).itemsize

    # Lane-dense padding of contraction (D) and output (E) dims when needed.
    Dp = _round_up(D, 128)
    Ep = _round_up(E, 128)

    x_rows = patches.reshape(B * T, D)                     # 2-D lane-dense row slab
    if Dp != D:
        x_rows = jnp.pad(x_rows, ((0, 0), (0, Dp - D)))
    w_p = weight_c
    if Dp != D or Ep != E:
        w_p = jnp.pad(w_p, ((0, Ep - E), (0, Dp - D)))
    b_p = bias.reshape(1, E).astype(jnp.float32)
    pos_body = pos_embedding.reshape(-1, E)[1:T + 1].astype(jnp.float32)   # (T, E)
    if Ep != E:
        b_p = jnp.pad(b_p, ((0, 0), (0, Ep - E)))
        pos_body = jnp.pad(pos_body, ((0, 0), (0, Ep - E)))

    BB = _pick_row_block(B, T, Dp, Ep, itemsize)
    RB = BB * T
    pos_tiled = jnp.tile(pos_body, (BB, 1))                # (RB, Ep), same every step

    body = pl.pallas_call(
        _patch_proj_kernel,
        out_shape=jax.ShapeDtypeStruct((B * T, Ep), jnp.float32),
        grid=(B // BB,),
        in_specs=[
            pl.BlockSpec((RB, Dp), lambda i: (i, 0)),      # patch rows for this step
            pl.BlockSpec((Ep, Dp), lambda i: (0, 0)),      # weight (grid-invariant)
            pl.BlockSpec((1, Ep), lambda i: (0, 0)),       # bias
            pl.BlockSpec((RB, Ep), lambda i: (0, 0)),      # tiled pos embedding
        ],
        out_specs=pl.BlockSpec((RB, Ep), lambda i: (i, 0)),
        compiler_params=pltpu.CompilerParams(
            dimension_semantics=("parallel",),             # shard steps across TCs (v7x)
            vmem_limit_bytes=32 * 1024 * 1024,             # explicit (v5e default is 16 MiB)
            allow_input_fusion=[True, False, False, False],  # fuse img_to_patch glue
        ),
    )(x_rows, w_p, b_p, pos_tiled)

    body = body[:, :E].reshape(B, T, E)                    # drop E padding, if any

    # Batch-invariant cls row: cls_token + pos_embedding[:, 0]; prepend outside the
    # kernel so the kernel's stores stay fully block-aligned.
    cls_row = cls_token.reshape(1, 1, E) + pos_embedding.reshape(1, -1, E)[:, :1, :]
    cls_full = jnp.broadcast_to(cls_row, (B, 1, E)).astype(body.dtype)
    return jnp.concatenate([cls_full, body], axis=1)       # [B, 1+T, E]


def reference(x, weight, bias, cls_token, pos_embedding, patch_size):
    """Pure-JAX reference mirroring the PyTorch forward."""
    p = img_to_patch(x, patch_size)                        # [B, T, D]
    B, T, _ = p.shape
    y = jnp.einsum("btd,ed->bte", p, weight) + bias        # Linear
    cls = jnp.broadcast_to(cls_token, (B, 1, cls_token.shape[-1]))
    y = jnp.concatenate([cls, y], axis=1)
    return y + pos_embedding[:, :T + 1]


if __name__ == "__main__":
    # Small shapes consistent with the module.
    B, C, H, W = 2, 4, 16, 16
    patch_size = 4
    embed_dim = 32
    num_patches = (H // patch_size) * (W // patch_size)    # 16
    patch_dim = C * patch_size * patch_size                # 64

    key = jax.random.PRNGKey(0)
    k_x, k_w, k_b, k_cls, k_pos = jax.random.split(key, 5)

    x = jax.random.normal(k_x, (B, C, H, W), dtype=jnp.float32)
    weight = jax.random.normal(k_w, (embed_dim, patch_dim), jnp.float32) * 0.02
    bias = jax.random.normal(k_b, (embed_dim,), jnp.float32) * 0.02
    cls_token = jax.random.normal(k_cls, (1, 1, embed_dim), jnp.float32)
    pos_embedding = jax.random.normal(
        k_pos, (1, 1 + num_patches, embed_dim), jnp.float32)

    out = patch_pos_emb(x, weight, bias, cls_token, pos_embedding,
                        patch_size=patch_size)
    out = jax.block_until_ready(out)

    ref = reference(x, weight, bias, cls_token, pos_embedding, patch_size)
    assert out.shape == (B, 1 + num_patches, embed_dim), out.shape
    assert jnp.allclose(out, ref, atol=1e-5, rtol=1e-5), "mismatch vs reference"

    print("KERNEL_OK")
</pallas_src>

<mosaic_0001>
module attributes {stable_mosaic.version = 11 : i64} {
  func.func @_patch_proj_kernel(%arg0: i32, %arg1: memref<32x128xf32, #tpu.memory_space<vmem>>, %arg2: memref<128x128xf32, #tpu.memory_space<vmem>>, %arg3: memref<1x128xf32, #tpu.memory_space<vmem>>, %arg4: memref<32x128xf32, #tpu.memory_space<vmem>>, %arg5: memref<32x128xf32, #tpu.memory_space<vmem>>) attributes {dimension_semantics = [#tpu.dimension_semantics<parallel>], iteration_bounds = array<i64: 1>, scalar_prefetch = 0 : i64, scratch_operands = 0 : i64, tpu.core_type = #tpu.core_type<tc>, window_params = [{transform_indices = @transform_0, window_bounds = array<i64: 32, 128>}, {pipeline_mode = #tpu.pipeline_mode<synchronous>, transform_indices = @transform_1, window_bounds = array<i64: 128, 128>}, {pipeline_mode = #tpu.pipeline_mode<synchronous>, transform_indices = @transform_2, window_bounds = array<i64: 1, 128>}, {pipeline_mode = #tpu.pipeline_mode<synchronous>, transform_indices = @transform_3, window_bounds = array<i64: 32, 128>}, {transform_indices = @transform_4, window_bounds = array<i64: 32, 128>}]} {
    %c0 = arith.constant 0 : index
    %c0_0 = arith.constant 0 : index
    %0 = vector.load %arg1[%c0, %c0_0] : memref<32x128xf32, #tpu.memory_space<vmem>>, vector<32x128xf32>
    %c0_1 = arith.constant 0 : index
    %c0_2 = arith.constant 0 : index
    %1 = vector.load %arg2[%c0_1, %c0_2] : memref<128x128xf32, #tpu.memory_space<vmem>>, vector<128x128xf32>
    %cst = arith.constant dense<0.000000e+00> : vector<32x128xf32>
    %2 = tpu.matmul %0, %1, %cst {dimension_numbers = #tpu.dot_dimension_numbers<[1], [1], [0], [0], [0, 0, 1, 0], [], []>} : vector<32x128xf32>, vector<128x128xf32>, vector<32x128xf32> -> vector<32x128xf32>
    %c0_3 = arith.constant 0 : index
    %c0_4 = arith.constant 0 : index
    %3 = vector.load %arg3[%c0_3, %c0_4] : memref<1x128xf32, #tpu.memory_space<vmem>>, vector<1x128xf32>
    %4 = vector.broadcast %3 : vector<1x128xf32> to vector<32x128xf32>
    %5 = arith.addf %2, %4 : vector<32x128xf32>
    %c0_5 = arith.constant 0 : index
    %c0_6 = arith.constant 0 : index
    %6 = vector.load %arg4[%c0_5, %c0_6] : memref<32x128xf32, #tpu.memory_space<vmem>>, vector<32x128xf32>
    %7 = arith.addf %5, %6 : vector<32x128xf32>
    %c0_7 = arith.constant 0 : index
    %c0_8 = arith.constant 0 : index
    %8 = vector.load %arg5[%c0_7, %c0_8] : memref<32x128xf32, #tpu.memory_space<vmem>>, vector<32x128xf32>
    tpu.vector_store %arg5[%c0_7, %c0_8], %7 {strides = array<i32>} : memref<32x128xf32, #tpu.memory_space<vmem>>, vector<32x128xf32>,
    return
  }
  func.func @transform_0(%arg0: i32) -> (i32, i32) {
    %c0_i32 = arith.constant 0 : i32
    %c0_i32_0 = arith.constant 0 : i32
    return %arg0, %c0_i32 : i32, i32
  }
  func.func @transform_1(%arg0: i32) -> (i32, i32) {
    %c0_i32 = arith.constant 0 : i32
    %c0_i32_0 = arith.constant 0 : i32
    %c0_i32_1 = arith.constant 0 : i32
    return %c0_i32, %c0_i32_0 : i32, i32
  }
  func.func @transform_2(%arg0: i32) -> (i32, i32) {
    %c0_i32 = arith.constant 0 : i32
    %c0_i32_0 = arith.constant 0 : i32
    %c0_i32_1 = arith.constant 0 : i32
    return %c0_i32, %c0_i32_0 : i32, i32
  }
  func.func @transform_3(%arg0: i32) -> (i32, i32) {
    %c0_i32 = arith.constant 0 : i32
    %c0_i32_0 = arith.constant 0 : i32
    %c0_i32_1 = arith.constant 0 : i32
    return %c0_i32, %c0_i32_0 : i32, i32
  }
  func.func @transform_4(%arg0: i32) -> (i32, i32) {
    %c0_i32 = arith.constant 0 : i32
    %c0_i32_0 = arith.constant 0 : i32
    return %arg0, %c0_i32 : i32, i32
  }
}

</mosaic_0001>

<bundles_post_ra>
// kernel: patch_pos_emb.2
= control target key start
LH: loop header
LB: loop body
LE: loop exit
PB: predicated region body
PF: predicated region fallthrough
CT: control target
= control target key end

     0   :  { %v20_v4 = vlaneseq  ;;  %s432_s0 = inlined_call_operand.vmem [shape: f32[128,128], index: 0, kind: input, shape index: {}]   ;;  %s433_s1 = inlined_call_operand.vmem [shape: f32[1,128], index: 1, kind: input, shape index: {}]   ;;  %s434_s2 = inlined_call_operand.vmem [shape: f32[32,128], index: 2, kind: input, shape index: {}]   ;;  %s435_s3 = inlined_call_operand.vmem [shape: f32[32,64], index: 3, kind: input, shape index: {}]   ;;  %s436_s4 = inlined_call_operand.<no memory space> [shape: f32[], index: 4, kind: input, shape index: {}]   ;;  %s437_s5 = inlined_call_operand.vmem [shape: f32[32,128], index: 5, kind: output, shape index: {}]  }
   0x1   :  { %v328_v0 = vstv %s436_s4  ;;  %v61_v1 = vld [vmem:[%s432_s0] sm:$0xff]  ;;  %v62_v2 = vld [vmem:[%s432_s0 + $0x8] sm:$0xff]  ;;  %v63_v3 = vld [vmem:[%s432_s0 + $0x10] sm:$0xff] }
   0x2   :  { %v247_v5 = vpack.c.bf16 %v62_v2, %v61_v1  ;;  %v64_v6 = vld [vmem:[%s432_s0 + $0x18] sm:$0xff]  ;;  %v342_v8 = vand.u32 127, %v20_v4  ;;  %v19_v9 = vld [vmem:[%s435_s3] sm:$0xff]  ;;  %v186_v10 = vld [vmem:[%s435_s3 + $0x10] sm:$0xff] }
   0x3   :  { %v251_v7 = vpack.c.bf16 %v64_v6, %v63_v3  ;;  %v65_v11 = vld [vmem:[%s432_s0 + $0x20] sm:$0xff]  ;;  %v66_v12 = vld [vmem:[%s432_s0 + $0x28] sm:$0xff]  ;;  %v67_v16 = vld [vmem:[%s432_s0 + $0x30] sm:$0xff] }
   0x4   :  { %248 = vmatprep.subr.bf16.mxu0 %v247_v5  ;;  %279 = vmatprep.subr.bf16.mxu1 %v247_v5  ;;  %vm23_vm0 = vcmp.lt.s32.totalorder %v342_v8, 64  ;;  %v255_v15 = vpack.c.bf16 %v66_v12, %v65_v11  ;;  %v68_v17 = vld [vmem:[%s432_s0 + $0x38] sm:$0xff]  ;;  %v69_v19 = vld [vmem:[%s432_s0 + $0x40] sm:$0xff]  ;;  %v70_v20 = vld [vmem:[%s432_s0 + $0x48] sm:$0xff] }
   0x5   :  { %250 = vmatpush3.bf16.xpose.msra.mxu0 %v247_v5  ;;  %287 = vmatpush3.bf16.xpose.msra.mxu1 %v247_v5  ;;  %v24_v13 = vsel %vm23_vm0, %v19_v9, %v328_v0  ;;  %v43_v14 = vsel %vm23_vm0, %v186_v10, %v328_v0  ;;  %v259_v18 = vpack.c.bf16 %v68_v17, %v67_v16  ;;  %v71_v22 = vld [vmem:[%s432_s0 + $0x50] sm:$0xff]  ;;  %v72_v23 = vld [vmem:[%s432_s0 + $0x58] sm:$0xff]  ;;  %v73_v25 = vld [vmem:[%s432_s0 + $0x60] sm:$0xff] }
   0x6   :  { %252 = vmatprep.subr.bf16.mxu0 %v251_v7  ;;  %280 = vmatprep.subr.bf16.mxu1 %v251_v7  ;;  %v263_v21 = vpack.c.bf16 %v70_v20, %v69_v19  ;;  %v267_v24 = vpack.c.bf16 %v72_v23, %v71_v22  ;;  %v74_v26 = vld [vmem:[%s432_s0 + $0x68] sm:$0xff]  ;;  %v75_v28 = vld [vmem:[%s432_s0 + $0x70] sm:$0xff]  ;;  %v76_v29 = vld [vmem:[%s432_s0 + $0x78] sm:$0xff] }
   0x7   :  { %241 = vmatprep.mubr.f32.mxu0 %v24_v13  ;;  %244 = vmatprep.mubr.f32.mxu1 %v43_v14  ;;  %v271_v27 = vpack.c.bf16 %v74_v26, %v73_v25  ;;  %v275_v30 = vpack.c.bf16 %v76_v29, %v75_v28  ;;  %v185_v31 = vld [vmem:[%s435_s3 + $0x8] sm:$0xff]  ;;  %v187_v32 = vld [vmem:[%s435_s3 + $0x18] sm:$0xff]  ;;  %v188_v35 = vld [vmem:[%s433_s1] ss:$0 sm:$0xff] }
   0x8   :  { %v33_v33 = vsel %vm23_vm0, %v185_v31, %v328_v0  ;;  %v53_v34 = vsel %vm23_vm0, %v187_v32, %v328_v0  ;;  %v170_v37 = vld [vmem:[%s434_s2 + $0x8] sm:$0xff]  ;;  %v172_v39 = vld [vmem:[%s434_s2 + $0x18] sm:$0xff]  ;;  %v169_v43 = vld [vmem:[%s434_s2] sm:$0xff] }
   0x9   :  { %v171_v45 = vld [vmem:[%s434_s2 + $0x10] sm:$0xff] }
   0xd   :  { %254 = vmatpush3.bf16.xpose.msra.mxu0 %v251_v7  ;;  %288 = vmatpush3.bf16.xpose.msra.mxu1 %v251_v7 }
   0xe   :  { %256 = vmatprep.subr.bf16.mxu0 %v255_v15  ;;  %281 = vmatprep.subr.bf16.mxu1 %v255_v15 }
  0x15   :  { %258 = vmatpush3.bf16.xpose.msra.mxu0 %v255_v15  ;;  %289 = vmatpush3.bf16.xpose.msra.mxu1 %v255_v15 }
  0x16   :  { %260 = vmatprep.subr.bf16.mxu0 %v259_v18  ;;  %282 = vmatprep.subr.bf16.mxu1 %v259_v18 }
  0x1d   :  { %262 = vmatpush3.bf16.xpose.msra.mxu0 %v259_v18  ;;  %290 = vmatpush3.bf16.xpose.msra.mxu1 %v259_v18 }
  0x1e   :  { %264 = vmatprep.subr.bf16.mxu0 %v263_v21  ;;  %283 = vmatprep.subr.bf16.mxu1 %v263_v21 }
  0x25   :  { %266 = vmatpush3.bf16.xpose.msra.mxu0 %v263_v21  ;;  %291 = vmatpush3.bf16.xpose.msra.mxu1 %v263_v21 }
  0x26   :  { %268 = vmatprep.subr.bf16.mxu0 %v267_v24  ;;  %284 = vmatprep.subr.bf16.mxu1 %v267_v24 }
  0x2d   :  { %270 = vmatpush3.bf16.xpose.msra.mxu0 %v267_v24  ;;  %292 = vmatpush3.bf16.xpose.msra.mxu1 %v267_v24 }
  0x2e   :  { %272 = vmatprep.subr.bf16.mxu0 %v271_v27  ;;  %285 = vmatprep.subr.bf16.mxu1 %v271_v27 }
  0x35   :  { %274 = vmatpush3.bf16.xpose.msra.mxu0 %v271_v27  ;;  %293 = vmatpush3.bf16.xpose.msra.mxu1 %v271_v27 }
  0x36   :  { %276 = vmatprep.subr.bf16.mxu0 %v275_v30  ;;  %286 = vmatprep.subr.bf16.mxu1 %v275_v30 }
  0x3d   :  { %278 = vmatpush3.bf16.xpose.msra.mxu0 %v275_v30  ;;  %294 = vmatpush3.bf16.xpose.msra.mxu1 %v275_v30 }
  0x44   :  { %242 = vmatmul.mubr.f32.vlgmr.msra.gmra.mrb[0].mxu0 %v33_v33  ;;  %245 = vmatmul.mubr.f32.vlgmr.msra.gmra.mrb[0].mxu1 %v53_v34 }
 0x117   :  { %v243_v36 = vpop.f32.mrb[0].mxu0  ;;  %v246_v38 = vpop.f32.mrb[0].mxu1 }
 0x118   :  { %v156_v40 = vadd.f32 %v243_v36, %v188_v35  ;;  %v166_v41 = vadd.f32 %v246_v38, %v188_v35  ;;  %v150_v42 = vpop.f32.mrb[1].mxu0  ;;  %v160_v44 = vpop.f32.mrb[1].mxu1 }
 0x119   :  { %v151_v46 = vadd.f32 %v188_v35, %v150_v42  ;;  %v161_v47 = vadd.f32 %v188_v35, %v160_v44 }
 0x11a   :  { %v174_v48 = vadd.f32 %v170_v37, %v156_v40  ;;  %v176_v49 = vadd.f32 %v172_v39, %v166_v41 }
 0x11b   :  { %v173_v50 = vadd.f32 %v169_v43, %v151_v46  ;;  %v175_v51 = vadd.f32 %v171_v45, %v161_v47 }
 0x11c   :  { %178 = vst [vmem:[%s437_s5 + $0x8] sm:$0xff] %v174_v48  ;;  %180 = vst [vmem:[%s437_s5 + $0x18] sm:$0xff] %v176_v49 }
 0x11d   :  { %177 = vst [vmem:[%s437_s5] sm:$0xff] %v173_v50  ;;  %179 = vst [vmem:[%s437_s5 + $0x10] sm:$0xff] %v175_v51 }

</bundles_post_ra>
